<compile_context>
chip_gen: v7x
topology: tpu7x:2x2x1
jax: 0.10.0
libtpu: 0.0.40
codegen_flags: <defaults>
</compile_context>

<pallas_src>
import functools

import jax
import jax.numpy as jnp
from jax.experimental import pallas as pl
from jax.experimental.pallas import tpu as pltpu


def _action_head_kernel(x_ref, w_ref, b_ref, o_ref, acc_ref, *,
                        group, rem, inv_mt):
    """Grid: (N tiles [parallel], M*T tiles [reduction, innermost]).

    x_ref:   (tile_n, tile_mt, D)    chunk of the flattened (person*time) axis
    w_ref:   (D, H)                  fc1 weight (pre-transposed), resident
    b_ref:   (1, H)                  fc1 bias, resident
    o_ref:   (tile_n, H)             L2-normalized embedding (last step only)
    acc_ref: (tile_n, group, D) f32  layout-matched running partial sums
    group:   8 when tile_mt % 8 == 0, else 1 (then tile_mt == M*T, single step)
    rem:     M*T % tile_mt (0 -> no ragged tail on the reduction axis)
    inv_mt:  1.0 / (M*T)
    """
    mt = pl.program_id(1)
    last = pl.num_programs(1) - 1

    @pl.when(mt == 0)
    def _():
        acc_ref[...] = jnp.zeros_like(acc_ref)

    def partial_sums(x):
        tn, tm, d = x.shape
        if group == 1:
            return jnp.sum(x, axis=1, keepdims=True)                 # (tn, 1, d)
        # Sublane-preserving split of the M*T axis into groups of 8; the sum
        # runs over a major axis -> plain VPU adds, no XLU relayout per step.
        return jnp.sum(x.reshape(tn, tm // group, group, d), axis=1)  # (tn, 8, d)

    if rem == 0:
        acc_ref[...] += partial_sums(x_ref[...].astype(jnp.float32))
    else:
        # Ragged tail on the reduction axis: mask garbage rows of the final
        # chunk only; every earlier chunk takes the unmasked fast path.
        @pl.when(mt != last)
        def _():
            acc_ref[...] += partial_sums(x_ref[...].astype(jnp.float32))

        @pl.when(mt == last)
        def _():
            x = x_ref[...].astype(jnp.float32)
            row = jax.lax.broadcasted_iota(jnp.int32, x.shape, 1)
            acc_ref[...] += partial_sums(jnp.where(row < rem, x, 0.0))

    @pl.when(mt == last)
    def _():
        # Single cross-sublane collapse per N tile, then the mean scale
        # (kept explicit instead of folding M*T into the bias -> no growth of
        # ||y|| with M*T, better f32 behaviour at large clip lengths).
        pooled = jnp.sum(acc_ref[...], axis=1) * inv_mt               # (tile_n, D)
        # fc1 on the MXU with f32 accumulation.
        y = jnp.dot(pooled, w_ref[...].astype(jnp.float32),
                    preferred_element_type=jnp.float32)               # (tile_n, H)
        y = y + b_ref[...].astype(jnp.float32)
        # F.normalize(dim=-1): y / max(||y||, 1e-12) == y * rsqrt(max(||y||^2, 1e-24)).
        sq = jnp.sum(y * y, axis=-1, keepdims=True)
        o_ref[...] = (y * jax.lax.rsqrt(jnp.maximum(sq, 1e-24))).astype(o_ref.dtype)


def action_head_embed(feat, weight, bias, *, tile_n=None, tile_mt=None):
    """ActionHeadEmbed forward.

    feat:   (N, M, T, J, C) float32
    weight: (H, J*C) float32 (PyTorch nn.Linear layout)
    bias:   (H,) float32
    returns (N, H) L2-normalized embeddings.
    """
    N, M, T, J, C = feat.shape
    D = J * C
    MT = M * T
    H = weight.shape[0]
    itemsize = jnp.dtype(feat.dtype).itemsize

    target_bytes = 6 * 1024 * 1024      # pooling-block budget (near HBM roofline)

    # ---- tile_n: multiple of 8 (or == N). When N allows, give the "parallel"
    # N axis at least 2 programs so both v7x TensorCores get work.
    if tile_n is None:
        if N <= 8:
            tile_n = N
        else:
            half = -(-N // 2)
            tile_n = min(128, -(-half // 8) * 8)
    else:
        tile_n = min(tile_n, N)
        if tile_n < N:
            tile_n = max(8, (tile_n // 8) * 8)
    # Guard for large D: shrink tile_n rather than accept an oversized minimum
    # block that would not fit v7x's 64 MiB VMEM once double-buffered.
    while tile_n > 8 and tile_n * 8 * D * itemsize > target_bytes:
        tile_n = max(8, ((tile_n // 2) // 8) * 8)

    # ---- tile_mt: multiple of 8 (ragged tail masked in-kernel) or == MT.
    if tile_mt is None:
        rows = target_bytes // max(1, tile_n * D * itemsize)
        rows = max(8, (rows // 8) * 8)
        tile_mt = MT if MT <= rows else rows
    else:
        tile_mt = min(tile_mt, MT)
        if tile_mt < MT:
            tile_mt = max(8, (tile_mt // 8) * 8)

    group = 8 if tile_mt % 8 == 0 else 1   # group==1 only when tile_mt == MT
    rem = MT % tile_mt                     # ragged tail length (0 == divisible)
    grid = (pl.cdiv(N, tile_n), pl.cdiv(MT, tile_mt))

    # ---- wrapper-side layout glue (plain JAX, no padded copies) -------------
    x = feat.reshape(N, MT, D)             # free view: (M,T)->MT, (J,C)->D
    w_t = jnp.transpose(weight)            # (D, H) for the MXU (one-time, small)
    b2 = bias.reshape(1, H)
    # NOTE: activations stay f32; bf16 pooling reads would halve HBM traffic on
    # this mem-bound kernel but do not hold the 1e-5 tolerance.

    # ---- VMEM budget & scheduler hints --------------------------------------
    vmem_need = (2 * tile_n * tile_mt * D * itemsize          # double-buffered x
                 + tile_n * group * D * 4                     # accumulator
                 + 2 * (D * H + H) * 4                        # resident weight/bias
                 + 2 * tile_n * H * itemsize)                 # output block
    vmem_limit = int(min(max(2 * vmem_need, 32 << 20), 64 << 20))

    cost = pl.CostEstimate(
        flops=2 * N * D * H + N * MT * D,
        transcendentals=0,
        bytes_accessed=N * MT * D * itemsize + (D * H + H) * 4 + N * H * itemsize)

    kernel = functools.partial(_action_head_kernel,
                               group=group, rem=rem, inv_mt=1.0 / MT)

    out = pl.pallas_call(
        kernel,
        out_shape=jax.ShapeDtypeStruct((N, H), feat.dtype),
        grid_spec=pltpu.PrefetchScalarGridSpec(
            num_scalar_prefetch=0,
            grid=grid,
            in_specs=[
                pl.BlockSpec((tile_n, tile_mt, D), lambda n, mt: (n, mt, 0)),
                # TODO(synk): at production sizes (D*H f32 ~ 71 MiB) tile the H
                # axis / single-buffer the weight; at these shapes it is noise,
                # so it stays fully resident.
                pl.BlockSpec((D, H), lambda n, mt: (0, 0)),     # weight, resident
                pl.BlockSpec((1, H), lambda n, mt: (0, 0)),     # bias, resident
            ],
            out_specs=pl.BlockSpec((tile_n, H), lambda n, mt: (n, 0)),
            scratch_shapes=[pltpu.VMEM((tile_n, group, D), jnp.float32)],
        ),
        compiler_params=pltpu.CompilerParams(
            dimension_semantics=("parallel", "arbitrary"),
            vmem_limit_bytes=vmem_limit),
        cost_estimate=cost,
    )(x, w_t, b2)

    return out


def _reference(feat, weight, bias):
    N, M, T, J, C = feat.shape
    f = jnp.transpose(feat, (0, 1, 3, 4, 2)).mean(axis=-1)   # (N, M, J, C)
    f = f.reshape(N, M, J * C).mean(axis=1)                  # (N, J*C)
    y = f @ weight.T + bias
    n = jnp.maximum(jnp.linalg.norm(y, axis=-1, keepdims=True), 1e-12)
    return y / n


if __name__ == "__main__":
    key = jax.random.PRNGKey(0)

    cases = [
        # Divisible multi-step reduction (two chunks of 8 over M*T = 16).
        dict(N=2, M=2, T=8, J=17, C=32, H=128, kw=dict(tile_mt=8)),
        # Ragged on both grid axes: N=10 with tile_n=8, M*T=9 with tile_mt=8
        # (exercises the in-kernel tail mask and dropped OOB output rows).
        dict(N=10, M=1, T=9, J=17, C=32, H=128, kw=dict(tile_n=8, tile_mt=8)),
        # Auto tiles: single reduction step with M*T not a multiple of 8.
        dict(N=4, M=3, T=5, J=5, C=24, H=96, kw=dict()),
    ]

    for i, c in enumerate(cases):
        key, k1, k2, k3 = jax.random.split(key, 4)
        N, M, T, J, C, H = c["N"], c["M"], c["T"], c["J"], c["C"], c["H"]
        feat = jax.random.normal(k1, (N, M, T, J, C), dtype=jnp.float32)
        # Deterministic synthetic params (PyTorch shapes: weight (H, J*C), bias (H,)).
        weight = jax.random.normal(k2, (H, J * C), dtype=jnp.float32) * 0.02
        bias = jax.random.normal(k3, (H,), dtype=jnp.float32) * 0.01

        out = jax.block_until_ready(action_head_embed(feat, weight, bias, **c["kw"]))
        ref = _reference(feat, weight, bias)
        assert out.shape == (N, H), f"case {i}: bad shape {out.shape}"
        assert jnp.allclose(out, ref, atol=2e-5, rtol=1e-5), f"case {i}: mismatch vs reference"

    print("KERNEL_OK")
</pallas_src>

<mosaic_0001>
module attributes {stable_mosaic.version = 11 : i64} {
  func.func @_action_head_kernel(%arg0: i32, %arg1: i32, %arg2: memref<2x8x544xf32, #tpu.memory_space<vmem>>, %arg3: memref<544x128xf32, #tpu.memory_space<vmem>>, %arg4: memref<1x128xf32, #tpu.memory_space<vmem>>, %arg5: memref<2x128xf32, #tpu.memory_space<vmem>>, %arg6: memref<2x8x544xf32, #tpu.memory_space<vmem>>) attributes {dimension_semantics = [#tpu.dimension_semantics<parallel>, #tpu.dimension_semantics<arbitrary>], iteration_bounds = array<i64: 1, 2>, scalar_prefetch = 0 : i64, scratch_operands = 1 : i64, tpu.core_type = #tpu.core_type<tc>, window_params = [{transform_indices = @transform_0, window_bounds = array<i64: 2, 8, 544>}, {pipeline_mode = #tpu.pipeline_mode<synchronous>, transform_indices = @transform_1, window_bounds = array<i64: 544, 128>}, {pipeline_mode = #tpu.pipeline_mode<synchronous>, transform_indices = @transform_2, window_bounds = array<i64: 1, 128>}, {transform_indices = @transform_3, window_bounds = array<i64: 2, 128>}]} {
    %c0_i32 = arith.constant 0 : i32
    %0 = arith.cmpi eq, %arg1, %c0_i32 : i32
    %1 = arith.extui %0 : i1 to i32
    %c0_i32_0 = arith.constant 0 : i32
    %2 = arith.cmpi ne, %1, %c0_i32_0 : i32
    scf.if %2 {
      %cst_10 = arith.constant 0.000000e+00 : f32
      %12 = vector.broadcast %cst_10 : f32 to vector<2x8x544xf32>
      %c0_11 = arith.constant 0 : index
      %c0_12 = arith.constant 0 : index
      %c0_13 = arith.constant 0 : index
      %13 = vector.load %arg6[%c0_11, %c0_12, %c0_13] : memref<2x8x544xf32, #tpu.memory_space<vmem>>, vector<2x8x544xf32>
      tpu.vector_store %arg6[%c0_11, %c0_12, %c0_13], %12 {strides = array<i32>} : memref<2x8x544xf32, #tpu.memory_space<vmem>>, vector<2x8x544xf32>,
    } else {
    }
    %c0 = arith.constant 0 : index
    %c0_1 = arith.constant 0 : index
    %c0_2 = arith.constant 0 : index
    %3 = vector.load %arg6[%c0, %c0_1, %c0_2] : memref<2x8x544xf32, #tpu.memory_space<vmem>>, vector<2x8x544xf32>
    %c0_3 = arith.constant 0 : index
    %c0_4 = arith.constant 0 : index
    %c0_5 = arith.constant 0 : index
    %4 = vector.load %arg2[%c0_3, %c0_4, %c0_5] : memref<2x8x544xf32, #tpu.memory_space<vmem>>, vector<2x8x544xf32>
    %5 = vector.shape_cast %4 : vector<2x8x544xf32> to vector<2x1x8x544xf32>
    %cst = arith.constant dense<0.000000e+00> : vector<2x8x544xf32>
    %6 = vector.multi_reduction <add>, %5, %cst [1] : vector<2x1x8x544xf32> to vector<2x8x544xf32>
    %7 = arith.addf %3, %6 : vector<2x8x544xf32>
    %c0_6 = arith.constant 0 : index
    %c0_7 = arith.constant 0 : index
    %c0_8 = arith.constant 0 : index
    %8 = vector.load %arg6[%c0_6, %c0_7, %c0_8] : memref<2x8x544xf32, #tpu.memory_space<vmem>>, vector<2x8x544xf32>
    tpu.vector_store %arg6[%c0_6, %c0_7, %c0_8], %7 {strides = array<i32>} : memref<2x8x544xf32, #tpu.memory_space<vmem>>, vector<2x8x544xf32>,
    %c1_i32 = arith.constant 1 : i32
    %9 = arith.cmpi eq, %arg1, %c1_i32 : i32
    %10 = arith.extui %9 : i1 to i32
    %c0_i32_9 = arith.constant 0 : i32
    %11 = arith.cmpi ne, %10, %c0_i32_9 : i32
    scf.if %11 {
      %c0_10 = arith.constant 0 : index
      %c0_11 = arith.constant 0 : index
      %c0_12 = arith.constant 0 : index
      %12 = vector.load %arg6[%c0_10, %c0_11, %c0_12] : memref<2x8x544xf32, #tpu.memory_space<vmem>>, vector<2x8x544xf32>
      %cst_13 = arith.constant dense<0.000000e+00> : vector<2x544xf32>
      %13 = vector.multi_reduction <add>, %12, %cst_13 [1] : vector<2x8x544xf32> to vector<2x544xf32>
      %cst_14 = arith.constant 6.250000e-02 : f32
      %14 = vector.broadcast %cst_14 : f32 to vector<2x544xf32>
      %15 = arith.mulf %13, %14 : vector<2x544xf32>
      %c0_15 = arith.constant 0 : index
      %c0_16 = arith.constant 0 : index
      %16 = vector.load %arg3[%c0_15, %c0_16] : memref<544x128xf32, #tpu.memory_space<vmem>>, vector<544x128xf32>
      %cst_17 = arith.constant dense<0.000000e+00> : vector<2x128xf32>
      %17 = tpu.matmul %15, %16, %cst_17 {dimension_numbers = #tpu.dot_dimension_numbers<[1], [0], [0], [1], [0, 0, 1, 1], [], []>} : vector<2x544xf32>, vector<544x128xf32>, vector<2x128xf32> -> vector<2x128xf32>
      %c0_18 = arith.constant 0 : index
      %c0_19 = arith.constant 0 : index
      %18 = vector.load %arg4[%c0_18, %c0_19] : memref<1x128xf32, #tpu.memory_space<vmem>>, vector<1x128xf32>
      %19 = vector.broadcast %18 : vector<1x128xf32> to vector<2x128xf32>
      %20 = arith.addf %17, %19 : vector<2x128xf32>
      %21 = arith.mulf %20, %20 : vector<2x128xf32>
      %cst_20 = arith.constant dense<0.000000e+00> : vector<2xf32>
      %22 = vector.multi_reduction <add>, %21, %cst_20 [1] : vector<2x128xf32> to vector<2xf32>
      %23 = vector.shape_cast %22 : vector<2xf32> to vector<2x1xf32>
      %cst_21 = arith.constant 1.000000e-24 : f32
      %24 = vector.broadcast %cst_21 : f32 to vector<2x1xf32>
      %25 = arith.maximumf %23, %24 : vector<2x1xf32>
      %26 = math.rsqrt %25 : vector<2x1xf32>
      %27 = vector.broadcast %26 : vector<2x1xf32> to vector<2x128xf32>
      %28 = arith.mulf %20, %27 : vector<2x128xf32>
      %c0_22 = arith.constant 0 : index
      %c0_23 = arith.constant 0 : index
      %29 = vector.load %arg5[%c0_22, %c0_23] : memref<2x128xf32, #tpu.memory_space<vmem>>, vector<2x128xf32>
      tpu.vector_store %arg5[%c0_22, %c0_23], %28 {strides = array<i32>} : memref<2x128xf32, #tpu.memory_space<vmem>>, vector<2x128xf32>,
    } else {
    }
    return
  }
  func.func @transform_0(%arg0: i32, %arg1: i32) -> (i32, i32, i32) {
    %c0_i32 = arith.constant 0 : i32
    %c0_i32_0 = arith.constant 0 : i32
    return %arg0, %arg1, %c0_i32 : i32, i32, i32
  }
  func.func @transform_1(%arg0: i32, %arg1: i32) -> (i32, i32) {
    %c0_i32 = arith.constant 0 : i32
    %c0_i32_0 = arith.constant 0 : i32
    %c0_i32_1 = arith.constant 0 : i32
    return %c0_i32, %c0_i32_0 : i32, i32
  }
  func.func @transform_2(%arg0: i32, %arg1: i32) -> (i32, i32) {
    %c0_i32 = arith.constant 0 : i32
    %c0_i32_0 = arith.constant 0 : i32
    %c0_i32_1 = arith.constant 0 : i32
    return %c0_i32, %c0_i32_0 : i32, i32
  }
  func.func @transform_3(%arg0: i32, %arg1: i32) -> (i32, i32) {
    %c0_i32 = arith.constant 0 : i32
    %c0_i32_0 = arith.constant 0 : i32
    return %arg0, %c0_i32 : i32, i32
  }
}

</mosaic_0001>

<bundles_post_ra>
// kernel: tpu_custom_call.1
= control target key start
LH: loop header
LB: loop body
LE: loop exit
PB: predicated region body
PF: predicated region fallthrough
CT: control target
= control target key end

     0   :  { %8 = vsyncpa [#allocation4], 0  ;;  %s1427_s0 = inlined_call_operand.hbm [shape: f32[2,16,544], index: 0, kind: input, shape index: {}]   ;;  %s1428_s1 = inlined_call_operand.hbm [shape: f32[544,128], index: 1, kind: input, shape index: {}]   ;;  %s1429_s2 = inlined_call_operand.vmem [shape: f32[1,128], index: 2, kind: input, shape index: {}]   ;;  %s1430_s3 = inlined_call_operand.hbm [shape: f32[2,128], index: 3, kind: output, shape index: {}]  }
   0x1   :  { %10 = vsyncpa [#allocation4 + $0x1], 0 }
   0x2   :  { %11 = vsyncpa [#allocation7], 0 }
   0x3   :  { %12 = vsyncpa [#allocation5], 0  ;;  %s1200_s12 = smov 0   ;;  %s1202_s13 = smov 0  }
   0x4   :  { %s1204_s14 = smov 0   ;;  %s1206_s15 = smov 0  }
   0x5   :  { %s1208_s16 = smov 0   ;;  %s1210_s17 = smov 0  }
   0x6 LB: > { %s766_s18 = sadd.s32 4294967295, %s1166_s17   ;;  %s39_s19 = sadd.s32 1, %s1154_s14  ;;  %s1166_s17 = sphi %s1210_s17, %s18_s17   ;;  %s1162_s16 = sphi %s1208_s16, %s1450_s16   ;;  %s1158_s15 = sphi %s1206_s15, %s1449_s15   ;;  %s1154_s14 = sphi %s1204_s14, %s1448_s14   ;;  %s1150_s13 = sphi %s1202_s13, %s1447_s13   ;;  %s1146_s12 = sphi %s1200_s12, %s1446_s12  }
   0x7   : > { %p46_p0 = scmp.ne.s32.totalorder %s1154_s14, %s1150_s13  ;;  %p47_p1 = scmp.eq.s32.totalorder %s1166_s17, 0 }
   0x8   : > { %p52_p2 = scmp.ne.s32.totalorder %s1150_s13, %s1146_s12  ;;  %p1236_p3 = scmp.eq.s32.totalorder %s766_s18, 0 }
   0x9   : > { %p48_p4 = por %p47_p1, %p46_p0  ;;  %p767_p5 = scmp.ge.s32.totalorder %s1166_s17, 1 }
   0xa   : > { %s1436_s20 = scalar_select %p1236_p3, 1, 0 }
   0xb   : > { %p1243_p6 = por %p1236_p3, %p52_p2  ;;  %p131_p7 = scmp.lt.s32.totalorder %s1166_s17, 3 }
   0xc   : > { %s1168_s23 = smov [#allocation6]   ;;  %p959_p10 = scmp.lt.s32.totalorder %s1166_s17, 2 }
   0xd   : > { %s1437_s21 = scalar_select %p1243_p6, 1, 0 }
   0xe   : > { %p1248_p8 = pnand %p767_p5, %p131_p7  ;;  %s143_s24 = sshll.u32 %s1168_s23, 4  ;;  %s144_s24 = int_to_ptr.vmem [resolvable:$true] %s143_s24 }
   0xf   : > { %p1261_p12 = pnand %p959_p10, %p48_p4  ;;  %s27_s27 = sadd.s32 1, %s1162_s16 }
  0x10   : > { %s1438_s22 = scalar_select %p1248_p8, 1, 0 }
  0x11   : > { %p950_p9 = pneg %p1248_p8  ;;  %s1024_s30 = scalar_lea.hbm %s1428_s1, 8704 }
  0x12   : > { %s1440_s26 = scalar_select %p1261_p12, 1, 0 }
  0x13   : > { %p1257_p11 = pnand %p950_p9, %p1236_p3  ;;  %p1025_p13 = scmp.ne.s32.totalorder %s1428_s1, %s1024_s30 }
  0x14   : > { %p1031_p4 = scmp.lt.u32.totalorder %s1024_s30, %s1428_s1 }
  0x15   : > { %p1026_p0 = pneg %p1257_p11 }
  0x17   : > { %p1027_p1 = pnand %p1026_p0, %p1025_p13 }
  0x19   : > { %p1028_p2 = pneg %p1027_p1 }
  0x1b   : > { %p1033_p5 = pnand %p1031_p4, %p1028_p2 }
  0x1d   : > { %1036 = shalt.err (!%p1033_p5)
}
  0x1e   : > { %s1037_s8 = scalar_lea.vmem %s144_s24, 8704  ;;  %p1045_p3 = scmp.lt.s32.totalorder %s144_s24, %s144_s24 }
  0x1f   : > { %p1038_p7 = scmp.ne.s32.totalorder %s144_s24, %s1037_s8  ;;  %p1046_p6 = scmp.lt.s32.totalorder %s1037_s8, %s1037_s8 }
  0x21   : > { %p1040_p9 = pnand %p1038_p7, %p1026_p0  ;;  %p1047_p8 = por %p1046_p6, %p1045_p3 }
  0x23   : > { %p1041_p10 = pneg %p1040_p9 }
  0x25   : > { %p1048_p12 = pnand %p1047_p8, %p1041_p10 }
  0x27   : > { %1051 = shalt.err (!%p1048_p12)
}
  0x28   : > { %s1169_s9 = smov 128   ;;  %s1170_s10 = smov 8  }
  0x29   : > { %953 = dma.hbm_to_vmem [thread:$0]  (!%p1257_p11), %s1428_s1, 8704, %s144_s24, [#allocation7], %s1169_s9, %s1169_s9, %s1170_s10  }
  0x2a   : > { %p28_p13 = scmp.ge.s32.totalorder %s27_s27, 2  ;;  %s160_s23 = sand.u32 1, %s1154_s14  }
  0x2b   : > { %s938_s28 = smul.u32 640, %s1162_s16  ;;  %s1300_s8 = scalar_lea.sflag [#allocation4], %s160_s23 }
  0x2c   : > { %s1452_s27 = smov (%p28_p13, %s27_s27), 0  ;;  %s937_s29 = smul.u32 80, %s160_s23 }
  0x2d   : > { %s35_s30 = ssub.s32 %s1162_s16, %s1452_s27  ;;  %s1291_s6 = scalar_lea.hbm %s1427_s0, %s938_s28 }
  0x2e   : > { %p37_p3 = scmp.eq.s32.totalorder %s35_s30, 0  ;;  %s164_s24 = scalar_lea.vmem [#allocation3], %s937_s29 }
  0x2f   : > { %s174_s25 = sshll.u32 %s164_s24, 4  ;;  %s1052_s9 = scalar_lea.hbm %s1291_s6, 1280  ;;  %s1298_s25 = int_to_ptr.vmem [resolvable:$true] %s174_s25 }
  0x30   : > { %s1296_s7 = scalar_select %p37_p3, %s1154_s14, %s39_s19  }
  0x31   : > { %p1053_p6 = scmp.ne.s32.totalorder %s1291_s6, %s1052_s9  ;;  %p1441_p8 = scmp.ne.s32.totalorder %s1440_s26, 0 }
  0x32   : > { %s1057_s12 = scalar_lea.hbm %s1427_s0, 2560  ;;  %p1058_p1 = scmp.lt.u32.totalorder %s1291_s6, %s1427_s0 }
  0x33   : > { %p1054_p11 = pneg %p1441_p8  ;;  %p1059_p2 = scmp.lt.u32.totalorder %s1057_s12, %s1052_s9 }
  0x34   : > { %p1061_p5 = scmp.lt.u32.totalorder %s1052_s9, %s1291_s6 }
  0x35   : > { %p1055_p12 = pnand %p1054_p11, %p1053_p6  ;;  %p1060_p4 = por %p1059_p2, %p1058_p1 }
  0x37   : > { %p1056_p0 = pneg %p1055_p12  ;;  %p1062_p7 = por %p1061_p5, %p1060_p4 }
  0x39   : > { %p1063_p9 = pnand %p1062_p7, %p1056_p0 }
  0x3b   : > { %1066 = shalt.err (!%p1063_p9)
}
  0x3c   : > { %s1067_s19 = scalar_lea.vmem %s1298_s25, 1280  ;;  %s1171_s23 = smov [#allocation3]  }
  0x3d   : > { %p1068_p10 = scmp.ne.s32.totalorder %s1298_s25, %s1067_s19  ;;  %s1072_s30 = sshll.u32 %s1171_s23, 4  ;;  %s1073_s30 = int_to_ptr.vmem [resolvable:$false] %s1072_s30 }
  0x3e   : > { %s1074_s4 = scalar_lea.vmem %s1073_s30, 2560  ;;  %p1075_p6 = scmp.lt.s32.totalorder %s1298_s25, %s1073_s30 }
  0x3f   : > { %p1070_p13 = pnand %p1068_p10, %p1054_p11  ;;  %p1076_p12 = scmp.lt.s32.totalorder %s1074_s4, %s1067_s19 }
  0x41   : > { %p1071_p3 = pneg %p1070_p13  ;;  %p1077_p1 = por %p1076_p12, %p1075_p6 }
  0x43   : > { %p1078_p2 = pnand %p1077_p1, %p1071_p3 }
  0x45   : > { %1081 = shalt.err (!%p1078_p2)
}
  0x46   : > { %s1172_s5 = smov 1280   ;;  %s1173_s24 = smov 640  }
  0x47   : > { %s1174_s9 = smov 40   ;;  %p1442_p11 = scmp.ne.s32.totalorder %s1438_s22, 0 }
  0x48   : > { %957 = dma.hbm_to_vmem [thread:$0]  (!%p1441_p8), %s1291_s6, 1280, %s1298_s25, %s1300_s8, %s1172_s5, %s1173_s24, %s1174_s9  }
  0x49   : > { %186 = sbr.rel (%p1442_p11) target bundleno = 554 (0x22a), region = 32  ;;  %s188_s10 = sand.u32 (!%p1442_p11), 1, %s1150_s13  }
  0x4a   : > { %s939_s11 = smul.u32 (!%p1442_p11), 80, %s188_s10  ;;  %s189_s12 = scalar_lea.sflag (!%p1442_p11), [#allocation4], %s188_s10 }
  0x4b   : > { %p1443_p0 = scmp.ne.s32.totalorder (!%p1442_p11), %s1437_s21, 0 }
  0x4c   : > { %s1331_s28 = scalar_lea.vmem (!%p1442_p11), [#allocation3], %s939_s11 }
  0x50   : > { %1133 = dma.done.wait (%p1443_p0), %s189_s12, 1280  }
  0x51   : > { %1135 = vsyncadd (%p1443_p0), %s189_s12, 4294966016  ;;  %p1444_p4 = scmp.ne.s32.totalorder %s1436_s20, 0 }
  0x53   : > { %1137 = dma.done.wait (%p1444_p4), [#allocation7], 8704  }
  0x54   : > { %1139 = vsyncadd (%p1444_p4), [#allocation7], 4294958592  ;;  %p773_p8 = scmp.ne.s32.totalorder %s1158_s15, 0 }
  0x55   : > { %vm223_vm0 = vcmask (!%p773_p8), 261120   ;;  %v1175_v0 = vmov (!%p773_p8), 0.0  }
  0x56   : > { %218 = sbr.rel (%p773_p8) target bundleno = 93 (0x5d), region = 44  ;;  %219 = vst [vmem:[#allocation2] sm:$0xff] (!%p773_p8), %v1175_v0  ;;  %220 = vst [vmem:[#allocation2 + $0x8] sm:$0xff] (!%p773_p8), %v1175_v0 }
  0x57   : > { %221 = vst [vmem:[#allocation2 + $0x10] sm:$0xff] (!%p773_p8), %v1175_v0  ;;  %222 = vst [vmem:[#allocation2 + $0x18] sm:$0xff] (!%p773_p8), %v1175_v0 }
  0x58   : > { %225 = vst [vmem:[#allocation2 + $0x28] sm:$0xff] (!%p773_p8), %v1175_v0  ;;  %226 = vst [vmem:[#allocation2 + $0x30] sm:$0xff] (!%p773_p8), %v1175_v0 }
  0x59   : > { %227 = vst [vmem:[#allocation2 + $0x38] sm:$0xff] (!%p773_p8), %v1175_v0  ;;  %228 = vst [vmem:[#allocation2 + $0x40] sm:$0xff] (!%p773_p8), %v1175_v0 }
  0x5a   : > { %224 = vst.msk [vmem:[#allocation2 + $0x20] sm:$0xff] (!%p773_p8), %vm223_vm0, %v1175_v0  ;;  %229 = vst.msk [vmem:[#allocation2 + $0x48] sm:$0xff] (!%p773_p8), %vm223_vm0, %v1175_v0 }
  0x5d PF: > { %v230_v1 = vld [vmem:[#allocation2] sm:$0xff]  ;;  %v231_v3 = vld [vmem:[#allocation2 + $0x8] sm:$0xff]  ;;  %vm274_vm1 = vcmask 261120   ;;  %p774_p5 = scmp.ne.s32.totalorder %s1158_s15, 1 }
  0x5e   : > { %v240_v2 = vld [vmem:[%s1331_s28] sm:$0xff]  ;;  %v241_v5 = vld [vmem:[%s1331_s28 + $0x8] sm:$0xff]  ;;  %v242_v7 = vld [vmem:[%s1331_s28 + $0x10] sm:$0xff]  ;;  %vm452_vm2 = vcmask (!%p774_p5), 1041409   ;;  %vm1177_vm3 = vmmov (!%p774_p5), 0   ;;  %vm675_vm4 = vcmask (!%p774_p5), 1041408  }
  0x5f   : > { %v260_v4 = vadd.f32 %v240_v2, %v230_v1  ;;  %v232_v6 = vld [vmem:[#allocation2 + $0x10] sm:$0xff]  ;;  %v261_v8 = vadd.f32 %v241_v5, %v231_v3  ;;  %v233_v10 = vld [vmem:[#allocation2 + $0x18] sm:$0xff]  ;;  %v235_v15 = vld [vmem:[#allocation2 + $0x28] sm:$0xff] }
  0x60   : > { %v262_v9 = vadd.f32 %v242_v7, %v232_v6  ;;  %v243_v11 = vld [vmem:[%s1331_s28 + $0x18] sm:$0xff]  ;;  %v244_v14 = vld [vmem:[%s1331_s28 + $0x20] sm:$0xff]  ;;  %v245_v16 = vld [vmem:[%s1331_s28 + $0x28] sm:$0xff] }
  0x61   : > { %v234_v12 = vld [vmem:[#allocation2 + $0x20] sm:$0xff]  ;;  %270 = vst [vmem:[#allocation2] sm:$0xff] %v260_v4  ;;  %v263_v13 = vadd.f32 %v243_v11, %v233_v10  ;;  %271 = vst [vmem:[#allocation2 + $0x8] sm:$0xff] %v261_v8  ;;  %v265_v18 = vadd.f32 %v245_v16, %v235_v15  ;;  %v236_v19 = vld [vmem:[#allocation2 + $0x30] sm:$0xff] }
  0x62   : > { %272 = vst [vmem:[#allocation2 + $0x10] sm:$0xff] %v262_v9  ;;  %v264_v17 = vadd.f32 %v244_v14, %v234_v12  ;;  %v246_v20 = vld [vmem:[%s1331_s28 + $0x30] sm:$0xff]  ;;  %v237_v21 = vld [vmem:[#allocation2 + $0x38] sm:$0xff]  ;;  %v248_v25 = vld [vmem:[%s1331_s28 + $0x40] sm:$0xff]  ;;  %284 = sbr.rel (%p774_p5) target bundleno = 529 (0x211), region = 48 }
  0x63   : > { %273 = vst [vmem:[#allocation2 + $0x18] sm:$0xff] %v263_v13  ;;  %v266_v22 = vadd.f32 %v246_v20, %v236_v19  ;;  %v247_v23 = vld [vmem:[%s1331_s28 + $0x38] sm:$0xff]  ;;  %v238_v24 = vld [vmem:[#allocation2 + $0x40] sm:$0xff]  ;;  %276 = vst [vmem:[#allocation2 + $0x28] sm:$0xff] %v265_v18 }
  0x64   : > { %275 = vst.msk [vmem:[#allocation2 + $0x20] sm:$0xff] %vm274_vm1, %v264_v17  ;;  %v267_v26 = vadd.f32 %v247_v23, %v237_v21  ;;  %v268_v27 = vadd.f32 %v248_v25, %v238_v24  ;;  %v239_v28 = vld [vmem:[#allocation2 + $0x48] sm:$0xff]  ;;  %v383_v31 = vld [vmem:[#allocation6 + $0x80] sm:$0xff] (!%p774_p5)  ;;  %v384_v32 = vld [vmem:[#allocation6 + $0x88] sm:$0xff] (!%p774_p5) }
  0x65   : > { %v249_v29 = vld [vmem:[%s1331_s28 + $0x48] sm:$0xff]  ;;  %277 = vst [vmem:[#allocation2 + $0x30] sm:$0xff] %v266_v22  ;;  %v367_v33 = vld [vmem:[#allocation6] sm:$0xff] (!%p774_p5)  ;;  %v867_v34 = vpack.c.bf16 (!%p774_p5), %v384_v32, %v383_v31  ;;  %v385_v42 = vld [vmem:[#allocation6 + $0x90] sm:$0xff] (!%p774_p5) }
  0x66   : > { %v269_v30 = vadd.f32 %v249_v29, %v239_v28  ;;  %278 = vst [vmem:[#allocation2 + $0x38] sm:$0xff] %v267_v26  ;;  %279 = vst [vmem:[#allocation2 + $0x40] sm:$0xff] %v268_v27  ;;  %v368_v35 = vld [vmem:[#allocation6 + $0x8] sm:$0xff] (!%p774_p5)  ;;  %v415_v36 = vld [vmem:[#allocation6 + $0x180] sm:$0xff] (!%p774_p5) }
  0x67   : > { %v416_v37 = vld [vmem:[#allocation6 + $0x188] sm:$0xff] (!%p774_p5)  ;;  %v869_v38 = vpack.c.bf16 (!%p774_p5), %v368_v35, %v367_v33  ;;  %v399_v40 = vld [vmem:[#allocation6 + $0x100] sm:$0xff] (!%p774_p5)  ;;  %868 = vmatprep.subr.bf16.mxu0 (!%p774_p5), %v867_v34  ;;  %v386_v44 = vld [vmem:[#allocation6 + $0x98] sm:$0xff] (!%p774_p5) }
  0x68   : > { %280 = vst.msk [vmem:[#allocation2 + $0x48] sm:$0xff] %vm274_vm1, %v269_v30  ;;  %v899_v39 = vpack.c.bf16 (!%p774_p5), %v416_v37, %v415_v36  ;;  %v400_v41 = vld [vmem:[#allocation6 + $0x108] sm:$0xff] (!%p774_p5)  ;;  %v369_v45 = vld [vmem:[#allocation6 + $0x10] sm:$0xff] (!%p774_p5)  ;;  %v370_v46 = vld [vmem:[#allocation6 + $0x18] sm:$0xff] (!%p774_p5)  ;;  %v871_v47 = vpack.c.bf16 (!%p774_p5), %v386_v44, %v385_v42 }
  0x69   : > { %v901_v43 = vpack.c.bf16 %v400_v41, %v399_v40  ;;  %870 = vmatpush3.bf16.msra.mxu0 %v869_v38  ;;  %v873_v48 = vpack.c.bf16 %v370_v46, %v369_v45  ;;  %v417_v49 = vld [vmem:[#allocation6 + $0x190] sm:$0xff]  ;;  %v418_v50 = vld [vmem:[#allocation6 + $0x198] sm:$0xff]  ;;  %v387_v54 = vld [vmem:[#allocation6 + $0xa0] sm:$0xff] }
  0x6a   : > { %900 = vmatprep.subr.bf16.mxu1 %v899_v39  ;;  %v401_v51 = vld [vmem:[#allocation6 + $0x110] sm:$0xff]  ;;  %v903_v52 = vpack.c.bf16 %v418_v50, %v417_v49  ;;  %v402_v53 = vld [vmem:[#allocation6 + $0x118] sm:$0xff]  ;;  %v388_v55 = vld [vmem:[#allocation6 + $0xa8] sm:$0xff]  ;;  %872 = vmatprep.subr.bf16.mxu0 %v871_v47 }
  0x6b   : > { %902 = vmatpush3.bf16.msra.mxu1 %v901_v43  ;;  %v905_v56 = vpack.c.bf16 %v402_v53, %v401_v51  ;;  %v875_v57 = vpack.c.bf16 %v388_v55, %v387_v54  ;;  %v371_v58 = vld [vmem:[#allocation6 + $0x20] sm:$0xff]  ;;  %v372_v59 = vld [vmem:[#allocation6 + $0x28] sm:$0xff]  ;;  %v389_v2 = vld [vmem:[#allocation6 + $0xb0] sm:$0xff] }
  0x6c   : > { %v419_v60 = vld [vmem:[#allocation6 + $0x1a0] sm:$0xff]  ;;  %904 = vmatprep.subr.bf16.mxu1 %v903_v52  ;;  %v420_v61 = vld [vmem:[#allocation6 + $0x1a8] sm:$0xff]  ;;  %v877_v0 = vpack.c.bf16 %v372_v59, %v371_v58  ;;  %v390_v3 = vld [vmem:[#allocation6 + $0xb8] sm:$0xff] }
  0x6d   : > { %v403_v62 = vld [vmem:[#allocation6 + $0x120] sm:$0xff]  ;;  %v404_v63 = vld [vmem:[#allocation6 + $0x128] sm:$0xff]  ;;  %874 = vmatpush3.bf16.msra.mxu0 %v873_v48  ;;  %v907_v1 = vpack.c.bf16 %v420_v61, %v419_v60  ;;  %v373_v4 = vld [vmem:[#allocation6 + $0x30] sm:$0xff]  ;;  %v879_v6 = vpack.c.bf16 %v390_v3, %v389_v2 }
  0x6e   : > { %876 = vmatprep.subr.bf16.mxu0 %v875_v57  ;;  %v909_v5 = vpack.c.bf16 %v404_v63, %v403_v62  ;;  %v374_v7 = vld [vmem:[#allocation6 + $0x38] sm:$0xff]  ;;  %v421_v8 = vld [vmem:[#allocation6 + $0x1b0] sm:$0xff]  ;;  %v391_v13 = vld [vmem:[#allocation6 + $0xc0] sm:$0xff] }
  0x6f   : > { %906 = vmatpush3.bf16.msra.mxu1 %v905_v56  ;;  %v422_v9 = vld [vmem:[#allocation6 + $0x1b8] sm:$0xff]  ;;  %v405_v11 = vld [vmem:[#allocation6 + $0x130] sm:$0xff]  ;;  %v392_v14 = vld [vmem:[#allocation6 + $0xc8] sm:$0xff]  ;;  %v881_v15 = vpack.c.bf16 %v374_v7, %v373_v4 }
  0x70   : > { %908 = vmatprep.subr.bf16.mxu1 %v907_v1  ;;  %v911_v10 = vpack.c.bf16 %v422_v9, %v421_v8  ;;  %v406_v12 = vld [vmem:[#allocation6 + $0x138] sm:$0xff]  ;;  %v375_v16 = vld [vmem:[#allocation6 + $0x40] sm:$0xff]  ;;  %v424_v18 = vld [vmem:[#allocation6 + $0x1c8] sm:$0xff]  ;;  %v883_v20 = vpack.c.bf16 %v392_v14, %v391_v13 }
  0x71   : > { %878 = vmatpush3.bf16.msra.mxu0 %v877_v0  ;;  %v423_v17 = vld [vmem:[#allocation6 + $0x1c0] sm:$0xff]  ;;  %v913_v19 = vpack.c.bf16 %v406_v12, %v405_v11  ;;  %v376_v21 = vld [vmem:[#allocation6 + $0x48] sm:$0xff]  ;;  %v393_v25 = vld [vmem:[#allocation6 + $0xd0] sm:$0xff] }
  0x72   : > { %880 = vmatprep.subr.bf16.mxu0 %v879_v6  ;;  %v407_v22 = vld [vmem:[#allocation6 + $0x140] sm:$0xff]  ;;  %v408_v23 = vld [vmem:[#allocation6 + $0x148] sm:$0xff]  ;;  %v915_v24 = vpack.c.bf16 %v424_v18, %v423_v17  ;;  %v394_v26 = vld [vmem:[#allocation6 + $0xd8] sm:$0xff]  ;;  %v885_v33 = vpack.c.bf16 %v376_v21, %v375_v16 }
  0x73   : > { %910 = vmatpush3.bf16.msra.mxu1 %v909_v5  ;;  %v425_v27 = vld [vmem:[#allocation6 + $0x1d0] sm:$0xff]  ;;  %v378_v29 = vld [vmem:[#allocation6 + $0x58] sm:$0xff]  ;;  %v395_v34 = vld [vmem:[#allocation6 + $0xe0] sm:$0xff]  ;;  %v917_v37 = vpack.c.bf16 %v408_v23, %v407_v22  ;;  %v887_v38 = vpack.c.bf16 %v394_v26, %v393_v25 }
  0x74   : > { %912 = vmatprep.subr.bf16.mxu1 %v911_v10  ;;  %v377_v28 = vld [vmem:[#allocation6 + $0x50] sm:$0xff]  ;;  %v426_v30 = vld [vmem:[#allocation6 + $0x1d8] sm:$0xff]  ;;  %v396_v35 = vld [vmem:[#allocation6 + $0xe8] sm:$0xff] }
  0x75   : > { %v409_v31 = vld [vmem:[#allocation6 + $0x150] sm:$0xff]  ;;  %v410_v32 = vld [vmem:[#allocation6 + $0x158] sm:$0xff]  ;;  %882 = vmatpush3.bf16.msra.mxu0 %v881_v15  ;;  %v1355_v36 = vld [vmem:[#allocation6 + $0x60] sm:$0xff]  ;;  %v919_v42 = vpack.c.bf16 %v426_v30, %v425_v27  ;;  %v889_v49 = vpack.c.bf16 %v378_v29, %v377_v28  ;;  %v891_v54 = vpack.c.bf16 %v396_v35, %v395_v34 }
  0x76   : > { %884 = vmatprep.subr.bf16.mxu0 %v883_v20  ;;  %v380_v39 = vld [vmem:[#allocation6 + $0x68] sm:$0xff]  ;;  %v427_v40 = vld [vmem:[#allocation6 + $0x1e0] sm:$0xff]  ;;  %v397_v45 = vld [vmem:[#allocation6 + $0xf0] sm:$0xff]  ;;  %v921_v50 = vpack.c.bf16 %v410_v32, %v409_v31 }
  0x77   : > { %914 = vmatpush3.bf16.msra.mxu1 %v913_v19  ;;  %v428_v41 = vld [vmem:[#allocation6 + $0x1e8] sm:$0xff]  ;;  %v411_v43 = vld [vmem:[#allocation6 + $0x160] sm:$0xff]  ;;  %v398_v46 = vld [vmem:[#allocation6 + $0xf8] sm:$0xff]  ;;  %v893_v55 = vpack.c.bf16 %v380_v39, %v1355_v36 }
  0x78   : > { %916 = vmatprep.subr.bf16.mxu1 %v915_v24  ;;  %v412_v44 = vld [vmem:[#allocation6 + $0x168] sm:$0xff]  ;;  %v1357_v47 = vld [vmem:[#allocation6 + $0x70] sm:$0xff]  ;;  %v1359_v48 = vld [vmem:[#allocation6 + $0x78] sm:$0xff]  ;;  %v923_v56 = vpack.c.bf16 %v428_v41, %v427_v40  ;;  %v895_v62 = vpack.c.bf16 %v398_v46, %v397_v45 }
  0x79   : > { %886 = vmatpush3.bf16.msra.mxu0 %v885_v33  ;;  %v429_v51 = vld [vmem:[#allocation6 + $0x1f0] sm:$0xff]  ;;  %v430_v52 = vld [vmem:[#allocation6 + $0x1f8] sm:$0xff]  ;;  %v291_v57 = vld [vmem:[#allocation2 + $0x30] sm:$0xff]  ;;  %v925_v61 = vpack.c.bf16 %v412_v44, %v411_v43  ;;  %v897_v63 = vpack.c.bf16 %v1359_v48, %v1357_v47 }
  0x7a   : > { %v286_v53 = vld [vmem:[#allocation2 + $0x8] sm:$0xff]  ;;  %888 = vmatprep.subr.bf16.mxu0 %v887_v38  ;;  %v1362_v59 = vld [vmem:[#allocation6 + $0x170] sm:$0xff]  ;;  %v332_v0 = vrot.slane %v291_v57, 4  ;;  %v288_v3 = vld [vmem:[#allocation2 + $0x18] sm:$0xff]  ;;  %v927_v9 = vpack.c.bf16 %v430_v52, %v429_v51  ;;  %v1176_v52 = vmov 0.0|0.0  }
  0x7b   : > { %918 = vmatpush3.bf16.msra.mxu1 %v917_v37  ;;  %v301_v58 = vrot.slane %v286_v53, 4  ;;  %v1364_v60 = vld [vmem:[#allocation6 + $0x178] sm:$0xff]  ;;  %v285_v1 = vld [vmem:[#allocation2] sm:$0xff]  ;;  %v313_v8 = vrot.slane %v288_v3, 4  ;;  %v287_v13 = vld [vmem:[#allocation2 + $0x10] sm:$0xff] }
  0x7c   : > { %920 = vmatprep.subr.bf16.mxu1 %v919_v42  ;;  %v290_v2 = vld [vmem:[#allocation2 + $0x28] sm:$0xff]  ;;  %v295_v5 = vrot.slane %v285_v1, 4  ;;  %v293_v7 = vld [vmem:[#allocation2 + $0x40] sm:$0xff]  ;;  %v333_v10 = vadd.f32 %v332_v0, %v291_v57  ;;  %v929_v11 = vpack.c.bf16 %v1364_v60, %v1362_v59  ;;  %v292_v14 = vld [vmem:[#allocation2 + $0x38] sm:$0xff]  ;;  %v307_v21 = vrot.slane %v287_v13, 4 }
  0x7d   : > { %v302_v4 = vadd.f32 %v301_v58, %v286_v53  ;;  %v326_v6 = vrot.slane %v290_v2, 4  ;;  %890 = vmatpush3.bf16.msra.mxu0 %v889_v49  ;;  %v344_v12 = vrot.slane %v293_v7, 4  ;;  %v314_v18 = vadd.f32 %v313_v8, %v288_v3  ;;  %v431_v45 = vld [vmem:[#allocation6 + $0x200] sm:$0xff]  ;;  %v432_v46 = vld [vmem:[#allocation6 + $0x208] sm:$0xff]  ;;  %v289_v58 = vld [vmem:[#allocation2 + $0x20] sm:$0xff] }
  0x7e   : > { %892 = vmatprep.subr.bf16.mxu0 %v891_v54  ;;  %v296_v16 = vadd.f32 %v295_v5, %v285_v1  ;;  %v334_v19 = vrot.slane %v333_v10, 2  ;;  %v338_v22 = vrot.slane %v292_v14, 4  ;;  %v308_v29 = vadd.f32 %v307_v21, %v287_v13  ;;  %v294_v59 = vld [vmem:[#allocation2 + $0x48] sm:$0xff] }
  0x7f   : > { %922 = vmatpush3.bf16.msra.mxu1 %v921_v50  ;;  %v303_v15 = vrot.slane %v302_v4, 2  ;;  %v327_v17 = vadd.f32 %v326_v6, %v290_v2  ;;  %v345_v20 = vadd.f32 %v344_v12, %v293_v7  ;;  %v315_v26 = vrot.slane %v314_v18, 2  ;;  %v434_v5 = vld [vmem:[#allocation6 + $0x218] sm:$0xff] }
  0x80   : > { %924 = vmatprep.subr.bf16.mxu1 %v923_v56  ;;  %v297_v24 = vrot.slane %v296_v16, 2  ;;  %v335_v27 = vadd.f32 %v334_v19, %v333_v10  ;;  %v339_v30 = vadd.f32 %v338_v22, %v292_v14  ;;  %v309_v37 = vrot.slane %v308_v29, 2 }
  0x81   : > { %v304_v23 = vadd.f32 %v303_v15, %v302_v4  ;;  %v328_v25 = vrot.slane %v327_v17, 2  ;;  %894 = vmatpush3.bf16.msra.mxu0 %v893_v55  ;;  %v346_v28 = vrot.slane %v345_v20, 2  ;;  %v316_v34 = vadd.f32 %v315_v26, %v314_v18  ;;  %v433_v4 = vld [vmem:[#allocation6 + $0x210] sm:$0xff] }
  0x82   : > { %896 = vmatprep.subr.bf16.mxu0 %v895_v62  ;;  %v298_v32 = vadd.f32 %v297_v24, %v296_v16  ;;  %v336_v35 = vrot.slane %v335_v27, 1  ;;  %v340_v38 = vrot.slane %v339_v30, 2  ;;  %v310_v47 = vadd.f32 %v309_v37, %v308_v29 }
  0x83   : > { %926 = vmatpush3.bf16.msra.mxu1 %v925_v61  ;;  %v305_v31 = vrot.slane %v304_v23, 1  ;;  %v329_v33 = vadd.f32 %v328_v25, %v327_v17  ;;  %v347_v36 = vadd.f32 %v346_v28, %v345_v20  ;;  %v317_v42 = vrot.slane %v316_v34, 1 }
  0x84   : > { %928 = vmatprep.subr.bf16.mxu1 %v927_v9  ;;  %v299_v40 = vrot.slane %v298_v32, 1  ;;  %v337_v43 = vadd.f32 %v336_v35, %v335_v27  ;;  %v341_v48 = vadd.f32 %v340_v38, %v339_v30  ;;  %v311_v56 = vrot.slane %v310_v47, 1 }
  0x85   : > { %v306_v39 = vadd.f32 %v305_v31, %v304_v23  ;;  %v330_v41 = vrot.slane %v329_v33, 1  ;;  %898 = vmatpush3.bf16.msra.mxu0 %v897_v63  ;;  %v348_v44 = vrot.slane %v347_v36, 1  ;;  %v318_v53 = vadd.f32 %v317_v42, %v316_v34  ;;  %v775_v31 = vld [vmem:[%s1429_s2] ss:$0 sm:$0xff] }
  0x86   : > { %v300_v50 = vadd.f32 %v299_v40, %v298_v32  ;;  %931 = vmatprep.subr.bf16.mxu0 %v1176_v52  ;;  %v363_v54 = vmul.f32 0.0625, %v337_v43  ;;  %v342_v57 = vrot.slane %v341_v48, 1  ;;  %v932_v63 = vpack.c.bf16 %v432_v46, %v431_v45 }
  0x87   : > { %v358_v49 = vmul.f32 0.0625, %v306_v39  ;;  %930 = vmatpush3.bf16.msra.mxu1 %v929_v11  ;;  %v331_v51 = vadd.f32 %v330_v41, %v329_v33  ;;  %v349_v55 = vadd.f32 %v348_v44, %v347_v36  ;;  %v360_v62 = vmul.f32 0.0625, %v318_v53 }
  0x88   : > { %v357_v60 = vmul.f32 0.0625, %v300_v50  ;;  %v312_v2 = vadd.f32 %v311_v56, %v310_v47  ;;  %v343_v3 = vadd.f32 %v342_v57, %v341_v48  ;;  %v319_v7 = vsel %vm274_vm1, %v289_v58, 0.0 }
  0x89   : > { %v362_v61 = vmul.f32 0.0625, %v331_v51  ;;  %v454_v0 = vsel %vm452_vm2, %v363_v54, %v358_v49  ;;  %v365_v1 = vmul.f32 0.0625, %v349_v55  ;;  %v350_v8 = vsel %vm274_vm1, %v294_v59, 0.0 }
  0x8a   : > { %528 = vmatprep.mubr.f32.mxu0 %v454_v0  ;;  %v359_v10 = vmul.f32 0.0625, %v312_v2  ;;  %v364_v11 = vmul.f32 0.0625, %v343_v3  ;;  %v320_v12 = vrot.slane %v319_v7, 4  ;;  %v935_v13 = vpack.c.bf16 %v434_v5, %v433_v4 }
  0x8b   : > { %v453_v6 = vsel %vm452_vm2, %v362_v61, %v357_v60  ;;  %v456_v9 = vsel %vm452_vm2, %v365_v1, %v360_v62  ;;  %v351_v14 = vrot.slane %v350_v8, 4  ;;  %v1178_v16 = vmov 0.0  }
  0x8c   : > { %529 = vmatmul.mubr.f32.vlgmr.msra.gmra.mrb[0].mxu0 %v453_v6  ;;  %598 = vmatprep.mubr.f32.mxu1 %v456_v9  ;;  %v455_v15 = vsel %vm452_vm2, %v364_v11, %v359_v10  ;;  %v321_v17 = vadd.f32 %v320_v12, %v319_v7 }
  0x8d   : > { %933 = vmatpush3.bf16.msra.mxu0 %v932_v63  ;;  %864 = vmatprep.mubr.msk.f32.mxu0 %vm1177_vm3, %v1178_v16  ;;  %v352_v18 = vadd.f32 %v351_v14, %v350_v8 }
  0x8e   : > { %934 = vmatprep.subr.bf16.mxu0 %v1176_v52  ;;  %599 = vmatmul.mubr.f32.vlgmr.msra.gmra.mrb[0].mxu1 %v455_v15  ;;  %v322_v19 = vrot.slane %v321_v17, 2 }
  0x8f   : > { %v353_v20 = vrot.slane %v352_v18, 2 }
  0x90   : > { %v323_v21 = vadd.f32 %v322_v19, %v321_v17 }
  0x91   : > { %936 = vmatpush3.bf16.msra.mxu0 %v935_v13  ;;  %v354_v22 = vadd.f32 %v353_v20, %v352_v18 }
  0x92   : > { %v324_v23 = vrot.slane %v323_v21, 1 }
  0x93   : > { %v355_v24 = vrot.slane %v354_v22, 1 }
  0x94   : > { %v325_v25 = vadd.f32 %v324_v23, %v323_v21 }
  0x95   : > { %v356_v26 = vadd.f32 %v355_v24, %v354_v22 }
  0x96   : > { %v361_v27 = vmul.f32 0.0625, %v325_v25 }
  0x97   : > { %v366_v28 = vmul.f32 0.0625, %v356_v26 }
  0x99   : > { %v457_v29 = vsel %vm452_vm2, %v366_v28, %v361_v27 }
  0x9a   : > { %865 = vmatmul.mubr.msk.f32.vlgmr.msra.gmra.mrb[2].mxu0 %vm274_vm1, %v457_v29 }
 0x15f   : > { %v813_v30 = vpop.f32.mrb[0].mxu0 }
 0x160   : > { %v814_v32 = vpop.f32.mrb[1].mxu0 }
 0x161   : > { %v815_v33 = vadd.f32 %v814_v32, %v813_v30  ;;  %v848_v34 = vpop.f32.mrb[0].mxu1 }
 0x162   : > { %v849_v36 = vpop.f32.mrb[1].mxu1 }
 0x163   : > { %v531_v35 = vadd.f32 %v815_v33, %v775_v31  ;;  %v850_v37 = vadd.f32 %v849_v36, %v848_v34 }
 0x165   : > { %v601_v38 = vadd.f32 %v850_v37, %v531_v35 }
 0x16d   : > { %v670_v39 = vpop.f32.mrb[2].mxu0 }
 0x16e   : > { %v671_v40 = vadd.f32 %v670_v39, %v601_v38  ;;  %v866_v41 = vpop.f32.mrb[3].mxu0 }
 0x170   : > { %v674_v42 = vmul.f32 %v671_v40, %v671_v40 }
 0x172   : > { %v676_v43 = vsel %vm675_vm4, %v674_v42, 0.0 }
 0x173   : > { %677 = vadd.xlane.f32.xlu0 %v676_v43 }
 0x200   : > { %v678_v44 = vpop.xlane.xlu0 %677 }
 0x201   : > { %v679_v45 = vmax.f32 %v678_v44, 1e-24 }
 0x203   : > { %1022 = vrsqrt.f32 %v679_v45 }
 0x20d   : > { %v1023_v46 = vpop.eup %1022 }
 0x20e   : > { %v681_v47 = vmul.f32 %v1023_v46, %v671_v40 }
 0x210   : > { %682 = vst [vmem:[#allocation8] sm:$0x3] %v681_v47 }
 0x211 PF: > { %p1383_p7 = scmp.eq.s32.totalorder %s766_s18, 1  ;;  %s1179_s22 = smov [#allocation8]  }
 0x212   : > { %s692_s26 = sshll.u32 %s1179_s22, 4  ;;  %s693_s26 = int_to_ptr.vmem [resolvable:$true] %s692_s26 }
 0x213   : > { %s1082_s6 = scalar_lea.vmem %s693_s26, 32  ;;  %p1089_p3 = scmp.lt.s32.totalorder %s693_s26, %s693_s26 }
 0x214   : > { %p1083_p9 = scmp.ne.s32.totalorder %s693_s26, %s1082_s6  ;;  %p1090_p6 = scmp.lt.s32.totalorder %s1082_s6, %s1082_s6 }
 0x216   : > { %p1084_p10 = pnand %p1083_p9, %p1383_p7  ;;  %p1091_p12 = por %p1090_p6, %p1089_p3 }
 0x218   : > { %p1085_p13 = pneg %p1084_p10 }
 0x21a   : > { %p1092_p1 = pnand %p1091_p12, %p1085_p13 }
 0x21c   : > { %1095 = shalt.err (!%p1092_p1)
}
 0x21d   : > { %s1096_s18 = scalar_lea.hbm %s1430_s3, 32 }
 0x21e   : > { %p1097_p2 = scmp.ne.s32.totalorder %s1430_s3, %s1096_s18  ;;  %p1102_p4 = scmp.lt.u32.totalorder %s1096_s18, %s1430_s3 }
 0x220   : > { %p1098_p11 = pnand %p1097_p2, %p1383_p7 }
 0x222   : > { %p1099_p0 = pneg %p1098_p11 }
 0x224   : > { %p1104_p8 = pnand %p1102_p4, %p1099_p0 }
 0x226   : > { %1107 = shalt.err (!%p1104_p8)
}
 0x227   : > { %947 = dma.vmem_to_hbm [thread:$0]  (%p1383_p7), %s693_s26, 32, %s1430_s3, [#allocation5]  }
 0x228   : > { %1141 = dma.done.wait (%p1383_p7), [#allocation5], 32  }
 0x229   : > { %1143 = vsyncadd (%p1383_p7), [#allocation5], 4294967264 }
 0x22a PF: > { %s18_s17 = sadd.s32 1, %s1166_s17   ;;  %s1446_s12 = smov %s1150_s13 }
 0x22b   : > { %p15_p5 = scmp.ge.s32.totalorder %s18_s17, 4   ;;  %s1447_s13 = smov %s1154_s14 }
 0x22c   : > { %s1448_s14 = smov %s1296_s7  ;;  %s1449_s15 = smov %s1162_s16 }
 0x22d   : > { %s1450_s16 = smov %s1452_s27  ;;  %17 = sbr.rel (!%p15_p5) target bundleno = 6 (0x6), region = 82 }
 0x234   :  { %705 = vsyncpa [#allocation4], 1 }
 0x235   :  { %707 = vsyncpa [#allocation4 + $0x1], 1 }
 0x236   :  { %708 = vsyncpa [#allocation7], 1 }
 0x237   :  { %709 = vsyncpa [#allocation5], 1 }
 0x238   :  { %711 = vsyncpa [#allocation5 + $0x1], 1 }

</bundles_post_ra>
